<compile_context>
chip_gen: v7x
topology: tpu7x:2x2x1
jax: 0.10.0
libtpu: 0.0.40
codegen_flags: <defaults>
</compile_context>

<pallas_src>
import functools

import jax
import jax.numpy as jnp
from jax.experimental import pallas as pl
from jax.experimental.pallas import tpu as pltpu


def _neg_sentinel(dtype):
    if jnp.issubdtype(dtype, jnp.floating):
        return jnp.array(-jnp.inf, dtype)
    return jnp.array(jnp.iinfo(dtype).min, dtype)


def _round_up(x: int, m: int) -> int:
    return (x + m - 1) // m * m


def _cdiv(a: int, b: int) -> int:
    return -(-a // b)


def _kmax_kernel(x_ref, o_ref, *, topk: int, chunked: bool, sub: int):
    # x_ref: (R, L) block in VMEM; o_ref: (R, topk) block in VMEM.  R % sub == 0.
    dtype = x_ref.dtype
    R, L = x_ref.shape
    neg = _neg_sentinel(dtype)
    C = 128
    n_sub = R // sub
    W = topk * C if chunked else L

    # Hoisted once (JAX does not CSE broadcast_in_dim inside loops).
    iota = jax.lax.broadcasted_iota(jnp.int32, (sub, W), 1)

    def knockout(work, r0):
        # Iterative "find max, knock out exactly one occurrence" (duplicates kept).
        # TODO(synk): NaN ordering follows IEEE max semantics, not torch.topk's
        # exact NaN-first ordering (a NaN-containing row repeats NaN for all k).
        w = work
        for j in range(topk):
            m = jnp.max(w, axis=-1, keepdims=True)                 # (sub, 1)
            o_ref[pl.ds(r0, sub), j:j + 1] = m.astype(o_ref.dtype)
            if j + 1 < topk:
                first = jnp.min(jnp.where(w == m, iota, W), axis=-1, keepdims=True)
                w = jnp.where(iota == first, neg, w)

    if chunked:
        n_full = L // C
        rem = L - n_full * C

        def insert(cand, v):
            # Compare-exchange insertion into per-lane descending top-k (pure VPU).
            cand = list(cand)
            for j in range(topk):
                hi = jnp.maximum(cand[j], v)
                v = jnp.minimum(cand[j], v)
                cand[j] = hi
            return tuple(cand)

        def process_rows(r0):
            # Candidates are (sub, 128) values -> stay in vregs, not VMEM carries.
            cand = tuple(jnp.full((sub, C), neg, dtype) for _ in range(topk))
            if n_full <= 8:
                for i in range(n_full):
                    cand = insert(cand, x_ref[pl.ds(r0, sub), i * C:(i + 1) * C])
            else:
                def chunk_body(i, c):
                    c0 = pl.multiple_of(i * C, C)
                    return insert(c, x_ref[pl.ds(r0, sub), pl.ds(c0, C)])
                cand = jax.lax.fori_loop(0, n_full, chunk_body, cand, unroll=4)
            if rem:
                v = x_ref[pl.ds(r0, sub), n_full * C:]
                v = jnp.concatenate(
                    [v, jnp.full((sub, C - rem), neg, dtype)], axis=-1)
                cand = insert(cand, v)
            # (sub, topk*128) merge buffer contains the true row top-k values.
            knockout(jnp.concatenate(cand, axis=-1), r0)
    else:
        def process_rows(r0):
            # Short rows: knock-out directly on the (sub, L) slice.
            knockout(x_ref[pl.ds(r0, sub), :], r0)

    if n_sub <= 4:
        for s in range(n_sub):               # fully static offsets for small blocks
            process_rows(s * sub)
    else:
        @pl.loop(0, n_sub)
        def _(s):
            process_rows(pl.multiple_of(s * sub, sub))


def _vmem_limit_bytes() -> int:
    cap = 64 << 20                            # conservative default (v7x per-TC VMEM)
    try:
        info = pltpu.get_tpu_info()
        c = getattr(info, "vmem_capacity_bytes", None)
        if c:
            cap = int(c)
    except Exception:
        pass
    # Stay well below physical capacity: 96 MiB on 128 MiB parts, 48 MiB on v7x.
    return max(32 << 20, min(cap * 3 // 4, 96 << 20))


def _pick_row_tile(rows, L, itemsize, use_chunked, sub, vmem_limit):
    # Layout-aware per-row VMEM bytes (lanes padded to multiples of 128).
    L_pad = _round_up(L, 128)
    per_row = 2 * L_pad * itemsize            # double-buffered input block
    per_row += 2 * 128 * itemsize             # double-buffered (lane-padded) output
    if not use_chunked:
        # Knock-out temporaries span the whole block: work copy + int32 iota/mask.
        per_row += L_pad * itemsize + 2 * L_pad * 4
    # Chunked-path temporaries only span `sub` rows (vreg resident) -> negligible.

    budget = max(2 << 20, (vmem_limit * 2) // 3)
    rt = max(sub, min(budget // max(per_row, 1), 1024))
    rt -= rt % sub
    rt = max(rt, sub)

    rows_rounded = _round_up(max(rows, 1), sub)
    rt = min(rt, rows_rounded)

    # Target >=8 grid steps (pipeline hides HBM DMA; both v7x TCs get >=4 steps)
    # but never shrink tiles below ~256 rows.
    min_tile = min(max(256, sub), rows_rounded)
    target = _round_up(_cdiv(rows, 8), sub)
    rt = min(rt, max(target, min_tile))
    rt = max(rt, sub)

    # Prefer an even step count so the two v7x TensorCores get balanced work.
    steps = _cdiv(rows, rt)
    if steps > 1 and steps % 2 == 1:
        rt_even = max(_round_up(_cdiv(rows, steps + 1), sub), sub)
        if rt_even >= min(min_tile, rt):
            rt = min(rt, rt_even)
    return rt


def kmax_pool1d(x: jax.Array, topk: int) -> jax.Array:
    """Top-k values along the last axis of x (..., L) -> (..., topk), descending."""
    orig_shape = x.shape
    L = int(orig_shape[-1])
    if not 1 <= topk <= L:
        raise ValueError("topk must satisfy 1 <= topk <= last-dim length")

    rows = 1
    for d in orig_shape[:-1]:
        rows *= int(d)
    rows = max(rows, 1)
    x2 = x.reshape(rows, L)                   # free reshape (same memory layout)

    itemsize = jnp.dtype(x.dtype).itemsize
    sub = 8 * max(1, 4 // max(itemsize, 1))   # 8 rows f32 / 16 bf16 / 32 int8
    use_chunked = topk * 128 < L
    vmem_limit = _vmem_limit_bytes()
    row_tile = _pick_row_tile(rows, L, itemsize, use_chunked, sub, vmem_limit)

    grid = (pl.cdiv(rows, row_tile),)         # ragged last block is masked
    out = pl.pallas_call(
        functools.partial(_kmax_kernel, topk=topk, chunked=use_chunked, sub=sub),
        out_shape=jax.ShapeDtypeStruct((rows, topk), x.dtype),   # no padded lanes
        grid_spec=pltpu.PrefetchScalarGridSpec(
            num_scalar_prefetch=0,
            grid=grid,
            in_specs=[pl.BlockSpec((row_tile, L), lambda i: (i, 0))],
            out_specs=pl.BlockSpec((row_tile, topk), lambda i: (i, 0)),
        ),
        compiler_params=pltpu.CompilerParams(
            dimension_semantics=("parallel",),
            vmem_limit_bytes=vmem_limit,
        ),
    )(x2)

    # TODO(synk): for very short rows (L << 128) a lane-packed segmented top-k
    # (g = 128 // L rows per 128-lane slab) would recover VPU/XLU lane utilization.
    return out.reshape(orig_shape[:-1] + (topk,))   # free reshape, no slice


if __name__ == "__main__":
    key = jax.random.PRNGKey(0)
    topk = 3

    # Case 1: short rows (direct knock-out path), (B, C, L) as the module implies.
    B, C, L = 2, 4, 16
    x = jax.random.normal(key, (B, C, L), dtype=jnp.float32)
    y = jax.block_until_ready(kmax_pool1d(x, topk))
    ref = jax.lax.top_k(x, topk)[0]
    assert y.shape == (B, C, topk), y.shape
    assert jnp.array_equal(y, ref), (y, ref)

    # Case 2: long rows + ragged row count + bf16 (chunked running-top-k path).
    x2 = jax.random.normal(jax.random.fold_in(key, 1), (2, 5, 640), dtype=jnp.bfloat16)
    y2 = jax.block_until_ready(kmax_pool1d(x2, topk))
    ref2 = jax.lax.top_k(x2, topk)[0]
    assert y2.shape == (2, 5, topk), y2.shape
    assert jnp.array_equal(y2, ref2), (y2, ref2)

    print("KERNEL_OK")
</pallas_src>

<mosaic_0001>
module attributes {stable_mosaic.version = 11 : i64} {
  func.func @_kmax_kernel(%arg0: i32, %arg1: memref<8x16xf32, #tpu.memory_space<vmem>>, %arg2: memref<8x3xf32, #tpu.memory_space<vmem>>) attributes {dimension_semantics = [#tpu.dimension_semantics<parallel>], iteration_bounds = array<i64: 1>, scalar_prefetch = 0 : i64, scratch_operands = 0 : i64, tpu.core_type = #tpu.core_type<tc>, window_params = [{transform_indices = @transform_0, window_bounds = array<i64: 8, 16>}, {transform_indices = @transform_1, window_bounds = array<i64: 8, 3>}]} {
    %0 = tpu.iota {dimensions = array<i32: 1>} : vector<8x16xi32>
    %c0 = arith.constant 0 : index
    %c0_0 = arith.constant 0 : index
    %1 = vector.load %arg1[%c0, %c0_0] : memref<8x16xf32, #tpu.memory_space<vmem>>, vector<8x16xf32>
    %cst = arith.constant dense<0xFF800000> : vector<8xf32>
    %2 = vector.multi_reduction <maximumf>, %1, %cst [1] : vector<8x16xf32> to vector<8xf32>
    %3 = vector.shape_cast %2 : vector<8xf32> to vector<8x1xf32>
    %c0_1 = arith.constant 0 : index
    %c0_2 = arith.constant 0 : index
    %4 = vector.load %arg2[%c0_1, %c0_2] : memref<8x3xf32, #tpu.memory_space<vmem>>, vector<8x1xf32>
    tpu.vector_store %arg2[%c0_1, %c0_2], %3 {strides = array<i32>} : memref<8x3xf32, #tpu.memory_space<vmem>>, vector<8x1xf32>,
    %5 = vector.broadcast %3 : vector<8x1xf32> to vector<8x16xf32>
    %6 = arith.cmpf oeq, %1, %5 : vector<8x16xf32>
    %c16_i32 = arith.constant 16 : i32
    %7 = vector.broadcast %c16_i32 : i32 to vector<8x16xi32>
    %8 = arith.select %6, %0, %7 : vector<8x16xi1>, vector<8x16xi32>
    %cst_3 = arith.constant dense<2147483647> : vector<8xi32>
    %9 = vector.multi_reduction <minsi>, %8, %cst_3 [1] : vector<8x16xi32> to vector<8xi32>
    %10 = vector.shape_cast %9 : vector<8xi32> to vector<8x1xi32>
    %11 = vector.broadcast %10 : vector<8x1xi32> to vector<8x16xi32>
    %12 = arith.cmpi eq, %0, %11 : vector<8x16xi32>
    %cst_4 = arith.constant 0xFF800000 : f32
    %13 = vector.broadcast %cst_4 : f32 to vector<8x16xf32>
    %14 = arith.select %12, %13, %1 : vector<8x16xi1>, vector<8x16xf32>
    %cst_5 = arith.constant dense<0xFF800000> : vector<8xf32>
    %15 = vector.multi_reduction <maximumf>, %14, %cst_5 [1] : vector<8x16xf32> to vector<8xf32>
    %16 = vector.shape_cast %15 : vector<8xf32> to vector<8x1xf32>
    %c0_6 = arith.constant 0 : index
    %c1 = arith.constant 1 : index
    %17 = vector.load %arg2[%c0_6, %c1] : memref<8x3xf32, #tpu.memory_space<vmem>>, vector<8x1xf32>
    tpu.vector_store %arg2[%c0_6, %c1], %16 {strides = array<i32>} : memref<8x3xf32, #tpu.memory_space<vmem>>, vector<8x1xf32>,
    %18 = vector.broadcast %16 : vector<8x1xf32> to vector<8x16xf32>
    %19 = arith.cmpf oeq, %14, %18 : vector<8x16xf32>
    %c16_i32_7 = arith.constant 16 : i32
    %20 = vector.broadcast %c16_i32_7 : i32 to vector<8x16xi32>
    %21 = arith.select %19, %0, %20 : vector<8x16xi1>, vector<8x16xi32>
    %cst_8 = arith.constant dense<2147483647> : vector<8xi32>
    %22 = vector.multi_reduction <minsi>, %21, %cst_8 [1] : vector<8x16xi32> to vector<8xi32>
    %23 = vector.shape_cast %22 : vector<8xi32> to vector<8x1xi32>
    %24 = vector.broadcast %23 : vector<8x1xi32> to vector<8x16xi32>
    %25 = arith.cmpi eq, %0, %24 : vector<8x16xi32>
    %cst_9 = arith.constant 0xFF800000 : f32
    %26 = vector.broadcast %cst_9 : f32 to vector<8x16xf32>
    %27 = arith.select %25, %26, %14 : vector<8x16xi1>, vector<8x16xf32>
    %cst_10 = arith.constant dense<0xFF800000> : vector<8xf32>
    %28 = vector.multi_reduction <maximumf>, %27, %cst_10 [1] : vector<8x16xf32> to vector<8xf32>
    %29 = vector.shape_cast %28 : vector<8xf32> to vector<8x1xf32>
    %c0_11 = arith.constant 0 : index
    %c2 = arith.constant 2 : index
    %30 = vector.load %arg2[%c0_11, %c2] : memref<8x3xf32, #tpu.memory_space<vmem>>, vector<8x1xf32>
    tpu.vector_store %arg2[%c0_11, %c2], %29 {strides = array<i32>} : memref<8x3xf32, #tpu.memory_space<vmem>>, vector<8x1xf32>,
    return
  }
  func.func @transform_0(%arg0: i32) -> (i32, i32) {
    %c0_i32 = arith.constant 0 : i32
    %c0_i32_0 = arith.constant 0 : i32
    return %arg0, %c0_i32 : i32, i32
  }
  func.func @transform_1(%arg0: i32) -> (i32, i32) {
    %c0_i32 = arith.constant 0 : i32
    %c0_i32_0 = arith.constant 0 : i32
    return %arg0, %c0_i32 : i32, i32
  }
}

</mosaic_0001>

<bundles_post_ra>
// kernel: tpu_custom_call.1
= control target key start
LH: loop header
LB: loop body
LE: loop exit
PB: predicated region body
PF: predicated region fallthrough
CT: control target
= control target key end

     0   :  { %6 = vsyncpa [#allocation3], 0  ;;  %s107_s6 = smov [#allocation2]   ;;  %s144_s0 = inlined_call_operand.hbm [shape: f32[8,16], index: 0, kind: input, shape index: {}]   ;;  %s145_s1 = inlined_call_operand.vmem [shape: f32[8,3], index: 1, kind: output, shape index: {}]  }
   0x1   :  { %s13_s7 = sshll.u32 %s107_s6, 4  ;;  %s83_s10 = scalar_lea.hbm %s144_s0, 128  ;;  %s14_s7 = int_to_ptr.vmem [resolvable:$true] %s13_s7 }
   0x2   :  { %p84_p0 = scmp.ne.s32.totalorder %s144_s0, %s83_s10  ;;  %p87_p1 = scmp.lt.u32.totalorder %s83_s10, %s144_s0 }
   0x4   :  { %p89_p2 = pnand %p87_p1, %p84_p0 }
   0x6   :  { %92 = shalt.err (!%p89_p2)
}
   0x7   :  { %s93_s15 = scalar_lea.vmem %s14_s7, 128  ;;  %p98_p4 = scmp.lt.s32.totalorder %s14_s7, %s14_s7 }
   0x8   :  { %p94_p3 = scmp.ne.s32.totalorder %s14_s7, %s93_s15  ;;  %p99_p5 = scmp.lt.s32.totalorder %s93_s15, %s93_s15 }
   0xa   :  { %p100_p6 = por %p99_p5, %p98_p4 }
   0xc   :  { %p101_p7 = pnand %p100_p6, %p94_p3 }
   0xe   :  { %104 = shalt.err (!%p101_p7)
}
   0xf   :  { %16 = dma.hbm_to_vmem [thread:$0]  %s144_s0, 128, %s14_s7, [#allocation3]  }
  0x10   :  { %105 = dma.done.wait [#allocation3], 128  }
  0x11   :  { %106 = vsyncadd [#allocation3], 4294967168  ;;  %vm23_vm0 = vcmask 130048   ;;  %v22_v0 = vld [vmem:[#allocation2] sm:$0xff]  ;;  %v20_v2 = vlaneseq  ;;  %vm27_vm1 = vcmask 7168   ;;  %vm51_vm5 = vcmask 15368  }
  0x12   :  { %v24_v1 = vsel %vm23_vm0, %v22_v0, -inf  ;;  %vm75_vm9 = vcmask 23568  }
  0x13   :  { %25 = vmax.xlane.f32.xlu0 %v24_v1  ;;  %v21_v3 = vand.u32 127, %v20_v2 }
  0xa0   :  { %v26_v4 = vpop.xlane.xlu0 %25 }
  0xa1   :  { %28 = vst.msk [vmem:[%s145_s1] sm:$0xff] %vm27_vm1, %v26_v4  ;;  %vm29_vm2 = vcmp.eq.f32.partialorder %v22_v0, %v26_v4 }
  0xa2   :  { %v30_v5 = vsel %vm29_vm2, %v21_v3, 16 }
  0xa3   :  { %v31_v6 = vsel %vm23_vm0, %v30_v5, 2147483647 }
  0xa4   :  { %v33_v7 = vshra.s32 %v31_v6, 16  ;;  %v32_v9 = vand.u32 65535, %v31_v6 }
  0xa6   :  { %v35_v8 = vcvt.s32.f32 %v33_v7  ;;  %v34_v11 = vcvt.s32.f32 %v32_v9 }
  0xa8   :  { %36 = vmin.xlane.f32.xlu0 %v35_v8 }
 0x135   :  { %v37_v10 = vpop.xlane.xlu0 %36 }
 0x136   :  { %vm38_vm3 = vcmp.eq.f32.partialorder %v35_v8, %v37_v10  ;;  %v43_v13 = vcvt.f32.s32 %v37_v10 }
 0x137   :  { %v39_v12 = vsel %vm38_vm3, %v34_v11, inf }
 0x138   :  { %40 = vmin.xlane.f32.xlu1 %v39_v12  ;;  %v44_v15 = vshll.u32 %v43_v13, 16 }
 0x1c5   :  { %v41_v14 = vpop.xlane.xlu1 %40 }
 0x1c6   :  { %v42_v16 = vcvt.f32.s32 %v41_v14 }
 0x1c8   :  { %v45_v17 = vadd.s32 %v44_v15, %v42_v16 }
 0x1ca   :  { %vm46_vm4 = vcmp.eq.s32.totalorder %v21_v3, %v45_v17 }
 0x1cb   :  { %v47_v18 = vsel %vm46_vm4, -inf, %v22_v0 }
 0x1cc   :  { %v48_v19 = vsel %vm23_vm0, %v47_v18, -inf }
 0x1cd   :  { %49 = vmax.xlane.f32.xlu1 %v48_v19 }
 0x25a   :  { %v50_v20 = vpop.xlane.xlu1 %49 }
 0x25b   :  { %52 = vst.msk [vmem:[%s145_s1] sm:$0xff] %vm51_vm5, %v50_v20  ;;  %vm53_vm6 = vcmp.eq.f32.partialorder %v47_v18, %v50_v20 }
 0x25c   :  { %v54_v21 = vsel %vm53_vm6, %v21_v3, 16 }
 0x25d   :  { %v55_v22 = vsel %vm23_vm0, %v54_v21, 2147483647 }
 0x25e   :  { %v57_v23 = vshra.s32 %v55_v22, 16  ;;  %v56_v25 = vand.u32 65535, %v55_v22 }
 0x260   :  { %v59_v24 = vcvt.s32.f32 %v57_v23  ;;  %v58_v27 = vcvt.s32.f32 %v56_v25 }
 0x262   :  { %60 = vmin.xlane.f32.xlu0 %v59_v24 }
 0x2ef   :  { %v61_v26 = vpop.xlane.xlu0 %60 }
 0x2f0   :  { %vm62_vm7 = vcmp.eq.f32.partialorder %v59_v24, %v61_v26  ;;  %v67_v29 = vcvt.f32.s32 %v61_v26 }
 0x2f1   :  { %v63_v28 = vsel %vm62_vm7, %v58_v27, inf }
 0x2f2   :  { %64 = vmin.xlane.f32.xlu1 %v63_v28  ;;  %v68_v31 = vshll.u32 %v67_v29, 16 }
 0x37f   :  { %v65_v30 = vpop.xlane.xlu1 %64 }
 0x380   :  { %v66_v32 = vcvt.f32.s32 %v65_v30 }
 0x382   :  { %v69_v33 = vadd.s32 %v68_v31, %v66_v32 }
 0x384   :  { %vm70_vm8 = vcmp.eq.s32.totalorder %v21_v3, %v69_v33 }
 0x385   :  { %v71_v34 = vsel %vm70_vm8, -inf, %v47_v18 }
 0x386   :  { %v72_v35 = vsel %vm23_vm0, %v71_v34, -inf }
 0x387   :  { %73 = vmax.xlane.f32.xlu0 %v72_v35 }
 0x414   :  { %v74_v36 = vpop.xlane.xlu0 %73 }
 0x415   :  { %76 = vst.msk [vmem:[%s145_s1] sm:$0xff] %vm75_vm9, %v74_v36 }
 0x416   :  { %81 = vsyncpa [#allocation3], 1 }

</bundles_post_ra>
